<compile_context>
chip_gen: v6e
topology: v6e:2x2x1
jax: 0.10.0
libtpu: 0.0.40
codegen_flags: <defaults>
</compile_context>

<pallas_src>
import functools

import numpy as np
import jax
import jax.numpy as jnp
from jax.experimental import pallas as pl
from jax.experimental.pallas import tpu as pltpu


# ---------------------------------------------------------------------------
# Fused Pallas kernel: a chain of (matmul + bias + activation) stages.
# refs = (x_ref, w0, b0, w1, b1, ..., o_ref); `acts` is a static tuple of
# activation names, one per stage.
# ---------------------------------------------------------------------------
def _fused_decoder_kernel(*refs, acts):
    x_ref = refs[0]
    o_ref = refs[-1]
    h = x_ref[...]
    for i, act in enumerate(acts):
        w_ref = refs[1 + 2 * i]
        b_ref = refs[2 + 2 * i]
        h = jnp.dot(h, w_ref[...], preferred_element_type=jnp.float32)
        h = h + b_ref[...]
        if act == "relu":
            h = jnp.maximum(h, 0.0)
        elif act == "sigmoid":
            h = jax.nn.sigmoid(h)
    o_ref[...] = h.astype(o_ref.dtype)


# ---------------------------------------------------------------------------
# Setup-time lowering: ConvTranspose2d -> one dense matmul (+ broadcast bias).
#
# out[co, oy, ox] = sum_{ci,iy,ix,ky,kx : oy=iy*s-p+ky, ox=ix*s-p+kx}
#                   in[ci, iy, ix] * W[ci, co, ky, kx]
# is encoded as  flat_out = flat_in @ W_dense, with NCHW flattening on both
# sides (matching PyTorch's .view semantics).
# ---------------------------------------------------------------------------
def conv_transpose_dense(w_torch, b, stride, pad, H, W):
    w = np.asarray(w_torch, np.float32)
    b = np.asarray(b, np.float32)
    Cin, Cout, KH, KW = w.shape
    Ho = (H - 1) * stride - 2 * pad + KH
    Wo = (W - 1) * stride - 2 * pad + KW
    wd = np.zeros((Cin, H, W, Cout, Ho, Wo), np.float32)
    for iy in range(H):
        for ky in range(KH):
            oy = iy * stride - pad + ky
            if not (0 <= oy < Ho):
                continue
            for ix in range(W):
                for kx in range(KW):
                    ox = ix * stride - pad + kx
                    if not (0 <= ox < Wo):
                        continue
                    wd[:, iy, ix, :, oy, ox] += w[:, :, ky, kx]
    wd = wd.reshape(Cin * H * W, Cout * Ho * Wo)
    bd = np.repeat(b, Ho * Wo)                      # per-Cout bias, spatial bcast
    return jnp.asarray(wd), jnp.asarray(bd), Cout, Ho, Wo


def prepare_decoder_params(params, ch, dim):
    """Flatten the decoder into a single chain of (W, b, act) matmul stages."""
    mats, acts = [], []
    for (w, b, act) in params["fc"]:
        mats.append((jnp.asarray(w, jnp.float32), jnp.asarray(b, jnp.float32)))
        acts.append(act)
    Cin, H, W = ch, dim, dim
    for (w, b, stride, pad, act) in params["conv"]:
        wd, bd, Cin, H, W = conv_transpose_dense(w, b, stride, pad, H, W)
        mats.append((wd, bd))
        acts.append(act)
    return mats, tuple(acts), (Cin, H, W)


# ---------------------------------------------------------------------------
# Decoder.forward — one fused pallas_call.
# ---------------------------------------------------------------------------
def decoder_forward(x, prepped):
    mats, acts, (C, H, W) = prepped
    B = x.shape[0]
    n_out = C * H * W

    flat_args = [x]
    for (w, b) in mats:
        flat_args.append(w)
        flat_args.append(b.reshape(1, -1))

    out_flat = pl.pallas_call(
        functools.partial(_fused_decoder_kernel, acts=acts),
        out_shape=jax.ShapeDtypeStruct((B, n_out), jnp.float32),
        in_specs=[pl.BlockSpec(memory_space=pltpu.MemorySpace.VMEM)]
        * len(flat_args),
        out_specs=pl.BlockSpec(memory_space=pltpu.MemorySpace.VMEM),
    )(*flat_args)

    # Free wrapper-side layout plumbing: (B, C*H*W) -> NCHW (PyTorch output).
    return out_flat.reshape(B, C, H, W)


# ---------------------------------------------------------------------------
# Pure NumPy reference (direct ConvTranspose2d scatter), for verification.
# ---------------------------------------------------------------------------
def ref_forward(x, params, ch, dim):
    def act_fn(a, act):
        if act == "relu":
            return np.maximum(a, 0.0)
        if act == "sigmoid":
            return 1.0 / (1.0 + np.exp(-a))
        return a

    dec = np.asarray(x, np.float32)
    for (w, b, act) in params["fc"]:
        dec = act_fn(dec @ np.asarray(w) + np.asarray(b), act)
    B = dec.shape[0]
    dec = dec.reshape(B, ch, dim, dim)
    for (w, b, stride, pad, act) in params["conv"]:
        w = np.asarray(w); b = np.asarray(b)
        Cin, Cout, KH, KW = w.shape
        _, _, H, W = dec.shape
        Ho = (H - 1) * stride - 2 * pad + KH
        Wo = (W - 1) * stride - 2 * pad + KW
        out = np.zeros((B, Cout, Ho, Wo), np.float32)
        for bi in range(B):
            for ci in range(Cin):
                for iy in range(H):
                    for ix in range(W):
                        v = dec[bi, ci, iy, ix]
                        for ky in range(KH):
                            oy = iy * stride - pad + ky
                            if oy < 0 or oy >= Ho:
                                continue
                            for kx in range(KW):
                                ox = ix * stride - pad + kx
                                if ox < 0 or ox >= Wo:
                                    continue
                                out[bi, :, oy, ox] += v * w[ci, :, ky, kx]
        out += b.reshape(1, Cout, 1, 1)
        dec = act_fn(out, act)
    return dec


# ---------------------------------------------------------------------------
if __name__ == "__main__":
    B, Z, ch, dim, hidden = 2, 8, 4, 4, 32
    ks = jax.random.split(jax.random.PRNGKey(0), 9)
    x = jax.random.normal(ks[0], (B, Z), jnp.float32)

    # layers_fc: Linear+ReLU x2   (weights stored as (in, out))
    fc_params = [
        (0.3 * jax.random.normal(ks[1], (Z, hidden), jnp.float32),
         0.1 * jax.random.normal(ks[2], (hidden,), jnp.float32), "relu"),
        (0.3 * jax.random.normal(ks[3], (hidden, ch * dim * dim), jnp.float32),
         0.1 * jax.random.normal(ks[4], (ch * dim * dim,), jnp.float32), "relu"),
    ]
    # layers: ConvTranspose2d weights in PyTorch layout (Cin, Cout, KH, KW)
    conv_params = [
        (0.2 * jax.random.normal(ks[5], (ch, 8, 4, 4), jnp.float32),
         0.05 * jax.random.normal(ks[6], (8,), jnp.float32), 2, 1, "relu"),
        (0.2 * jax.random.normal(ks[7], (8, 1, 4, 4), jnp.float32),
         0.05 * jax.random.normal(ks[8], (1,), jnp.float32), 2, 1, "sigmoid"),
    ]
    params = {"fc": fc_params, "conv": conv_params}

    # One-time setup: lower conv-transpose layers to dense matmuls.
    prepped = prepare_decoder_params(params, ch, dim)

    out = decoder_forward(x, prepped)
    out = jax.block_until_ready(out)
    assert out.shape == (B, 1, 16, 16), out.shape

    ref = ref_forward(x, params, ch, dim)
    np.testing.assert_allclose(np.asarray(out), ref, rtol=1e-4, atol=1e-4)

    print("KERNEL_OK")
</pallas_src>

<mosaic_0001>
module attributes {stable_mosaic.version = 11 : i64} {
  func.func @_fused_decoder_kernel(%arg0: memref<2x8xf32, #tpu.memory_space<vmem>>, %arg1: memref<8x32xf32, #tpu.memory_space<vmem>>, %arg2: memref<1x32xf32, #tpu.memory_space<vmem>>, %arg3: memref<32x64xf32, #tpu.memory_space<vmem>>, %arg4: memref<1x64xf32, #tpu.memory_space<vmem>>, %arg5: memref<64x512xf32, #tpu.memory_space<vmem>>, %arg6: memref<1x512xf32, #tpu.memory_space<vmem>>, %arg7: memref<512x256xf32, #tpu.memory_space<vmem>>, %arg8: memref<1x256xf32, #tpu.memory_space<vmem>>, %arg9: memref<2x256xf32, #tpu.memory_space<vmem>>) attributes {dimension_semantics = [], scalar_prefetch = 0 : i64, scratch_operands = 0 : i64, tpu.core_type = #tpu.core_type<tc>} {
    %c0 = arith.constant 0 : index
    %c0_0 = arith.constant 0 : index
    %0 = vector.load %arg0[%c0, %c0_0] : memref<2x8xf32, #tpu.memory_space<vmem>>, vector<2x8xf32>
    %c0_1 = arith.constant 0 : index
    %c0_2 = arith.constant 0 : index
    %1 = vector.load %arg1[%c0_1, %c0_2] : memref<8x32xf32, #tpu.memory_space<vmem>>, vector<8x32xf32>
    %cst = arith.constant dense<0.000000e+00> : vector<2x32xf32>
    %2 = tpu.matmul %0, %1, %cst {dimension_numbers = #tpu.dot_dimension_numbers<[1], [0], [0], [1], [0, 0, 1, 1], [], []>} : vector<2x8xf32>, vector<8x32xf32>, vector<2x32xf32> -> vector<2x32xf32>
    %c0_3 = arith.constant 0 : index
    %c0_4 = arith.constant 0 : index
    %3 = vector.load %arg2[%c0_3, %c0_4] : memref<1x32xf32, #tpu.memory_space<vmem>>, vector<1x32xf32>
    %4 = vector.broadcast %3 : vector<1x32xf32> to vector<2x32xf32>
    %5 = arith.addf %2, %4 : vector<2x32xf32>
    %cst_5 = arith.constant 0.000000e+00 : f32
    %6 = vector.broadcast %cst_5 : f32 to vector<2x32xf32>
    %7 = arith.maximumf %5, %6 : vector<2x32xf32>
    %c0_6 = arith.constant 0 : index
    %c0_7 = arith.constant 0 : index
    %8 = vector.load %arg3[%c0_6, %c0_7] : memref<32x64xf32, #tpu.memory_space<vmem>>, vector<32x64xf32>
    %cst_8 = arith.constant dense<0.000000e+00> : vector<2x64xf32>
    %9 = tpu.matmul %7, %8, %cst_8 {dimension_numbers = #tpu.dot_dimension_numbers<[1], [0], [0], [1], [0, 0, 1, 1], [], []>} : vector<2x32xf32>, vector<32x64xf32>, vector<2x64xf32> -> vector<2x64xf32>
    %c0_9 = arith.constant 0 : index
    %c0_10 = arith.constant 0 : index
    %10 = vector.load %arg4[%c0_9, %c0_10] : memref<1x64xf32, #tpu.memory_space<vmem>>, vector<1x64xf32>
    %11 = vector.broadcast %10 : vector<1x64xf32> to vector<2x64xf32>
    %12 = arith.addf %9, %11 : vector<2x64xf32>
    %cst_11 = arith.constant 0.000000e+00 : f32
    %13 = vector.broadcast %cst_11 : f32 to vector<2x64xf32>
    %14 = arith.maximumf %12, %13 : vector<2x64xf32>
    %c0_12 = arith.constant 0 : index
    %c0_13 = arith.constant 0 : index
    %15 = vector.load %arg5[%c0_12, %c0_13] : memref<64x512xf32, #tpu.memory_space<vmem>>, vector<64x512xf32>
    %cst_14 = arith.constant dense<0.000000e+00> : vector<2x512xf32>
    %16 = tpu.matmul %14, %15, %cst_14 {dimension_numbers = #tpu.dot_dimension_numbers<[1], [0], [0], [1], [0, 0, 1, 1], [], []>} : vector<2x64xf32>, vector<64x512xf32>, vector<2x512xf32> -> vector<2x512xf32>
    %c0_15 = arith.constant 0 : index
    %c0_16 = arith.constant 0 : index
    %17 = vector.load %arg6[%c0_15, %c0_16] : memref<1x512xf32, #tpu.memory_space<vmem>>, vector<1x512xf32>
    %18 = vector.broadcast %17 : vector<1x512xf32> to vector<2x512xf32>
    %19 = arith.addf %16, %18 : vector<2x512xf32>
    %cst_17 = arith.constant 0.000000e+00 : f32
    %20 = vector.broadcast %cst_17 : f32 to vector<2x512xf32>
    %21 = arith.maximumf %19, %20 : vector<2x512xf32>
    %c0_18 = arith.constant 0 : index
    %c0_19 = arith.constant 0 : index
    %22 = vector.load %arg7[%c0_18, %c0_19] : memref<512x256xf32, #tpu.memory_space<vmem>>, vector<512x256xf32>
    %cst_20 = arith.constant dense<0.000000e+00> : vector<2x256xf32>
    %23 = tpu.matmul %21, %22, %cst_20 {dimension_numbers = #tpu.dot_dimension_numbers<[1], [0], [0], [1], [0, 0, 1, 1], [], []>} : vector<2x512xf32>, vector<512x256xf32>, vector<2x256xf32> -> vector<2x256xf32>
    %c0_21 = arith.constant 0 : index
    %c0_22 = arith.constant 0 : index
    %24 = vector.load %arg8[%c0_21, %c0_22] : memref<1x256xf32, #tpu.memory_space<vmem>>, vector<1x256xf32>
    %25 = vector.broadcast %24 : vector<1x256xf32> to vector<2x256xf32>
    %26 = arith.addf %23, %25 : vector<2x256xf32>
    %27 = arith.negf %26 : vector<2x256xf32>
    %28 = math.exp %27 : vector<2x256xf32>
    %cst_23 = arith.constant 1.000000e+00 : f32
    %29 = vector.broadcast %cst_23 : f32 to vector<2x256xf32>
    %30 = arith.addf %29, %28 : vector<2x256xf32>
    %31 = arith.divf %29, %30 : vector<2x256xf32>
    %c0_24 = arith.constant 0 : index
    %c0_25 = arith.constant 0 : index
    %32 = vector.load %arg9[%c0_24, %c0_25] : memref<2x256xf32, #tpu.memory_space<vmem>>, vector<2x256xf32>
    tpu.vector_store %arg9[%c0_24, %c0_25], %31 {strides = array<i32>} : memref<2x256xf32, #tpu.memory_space<vmem>>, vector<2x256xf32>,
    return
  }
}

</mosaic_0001>

<bundles_post_ra>
// kernel: tpu_custom_call.1
= control target key start
LH: loop header
LB: loop body
LE: loop exit
PB: predicated region body
PF: predicated region fallthrough
CT: control target
= control target key end

     0   :  { %14 = vsyncpa [#allocation3], 0  ;;  %s1107_s0 = inlined_call_operand.hbm [shape: f32[2,8], index: 0, kind: input, shape index: {}]   ;;  %s1108_s1 = inlined_call_operand.hbm [shape: f32[8,32], index: 1, kind: input, shape index: {}]   ;;  %s1109_s2 = inlined_call_operand.vmem [shape: f32[1,32], index: 2, kind: input, shape index: {}]   ;;  %s1110_s3 = inlined_call_operand.hbm [shape: f32[32,64], index: 3, kind: input, shape index: {}]   ;;  %s1111_s4 = inlined_call_operand.hbm [shape: f32[1,64], index: 4, kind: input, shape index: {}]   ;;  %s1112_s5 = inlined_call_operand.hbm [shape: f32[64,512], index: 5, kind: input, shape index: {}]   ;;  %s1113_s6 = inlined_call_operand.vmem [shape: f32[1,512], index: 6, kind: input, shape index: {}]   ;;  %s1114_s7 = inlined_call_operand.hbm [shape: f32[512,256], index: 7, kind: input, shape index: {}]   ;;  %s1115_s8 = inlined_call_operand.vmem [shape: f32[1,256], index: 8, kind: input, shape index: {}]   ;;  %s1116_s9 = inlined_call_operand.hbm [shape: f32[2,256], index: 9, kind: output, shape index: {}]  }
   0x1   :  { %15 = vsyncpa [#allocation6], 0 }
   0x2   :  { %16 = vsyncpa [#allocation9], 0 }
   0x3   :  { %17 = vsyncpa [#allocation12], 0 }
   0x4   :  { %18 = vsyncpa [#allocation4], 0  ;;  %s1012_s30 = smov [#allocation5]   ;;  %s1013_s11 = smov [#allocation8]  }
   0x5   :  { %s35_s10 = sshll.u32 %s1012_s30, 4  ;;  %s59_s12 = sshll.u32 %s1013_s11, 4  ;;  %s36_s10 = int_to_ptr.vmem [resolvable:$true] %s35_s10  ;;  %s60_s12 = int_to_ptr.vmem [resolvable:$true] %s59_s12 }
   0x6   :  { %s870_s13 = scalar_lea.vmem %s36_s10, 128  ;;  %p875_p1 = scmp.lt.s32.totalorder %s36_s10, %s36_s10 }
   0x7   :  { %p871_p0 = scmp.ne.s32.totalorder %s36_s10, %s870_s13  ;;  %p876_p2 = scmp.lt.s32.totalorder %s870_s13, %s870_s13 }
   0x9   :  { %p877_p3 = por %p876_p2, %p875_p1 }
   0xb   :  { %p878_p4 = pnand %p877_p3, %p871_p0 }
   0xd   :  { %881 = shalt.err (!%p878_p4)
}
   0xe   :  { %38 = dma.hbm_to_vmem [thread:$0]  %s1108_s1, 128, %s36_s10, [#allocation6]  }
   0xf   :  { %s890_s16 = scalar_lea.vmem %s60_s12, 16  ;;  %s894_s17 = scalar_lea.vmem %s60_s12, 32 }
  0x10   :  { %p891_p5 = scmp.ne.s32.totalorder %s60_s12, %s890_s16  ;;  %p895_p6 = scmp.lt.s32.totalorder %s60_s12, %s60_s12 }
  0x11   :  { %p896_p7 = scmp.lt.s32.totalorder %s894_s17, %s890_s16 }
  0x13   :  { %p897_p8 = por %p896_p7, %p895_p6 }
  0x15   :  { %p898_p9 = pnand %p897_p8, %p891_p5 }
  0x17   :  { %901 = shalt.err (!%p898_p9)
}
  0x18   :  { %62 = dma.hbm_to_vmem [thread:$0]  %s1111_s4, 16, %s60_s12, [#allocation9]  }
  0x19   :  { %s1014_s20 = smov [#allocation2]   ;;  %s1015_s22 = smov [#allocation7]  }
  0x1a   :  { %s25_s21 = sshll.u32 %s1014_s20, 4  ;;  %s46_s23 = sshll.u32 %s1015_s22, 4  ;;  %s26_s21 = int_to_ptr.vmem [resolvable:$true] %s25_s21  ;;  %s47_s23 = int_to_ptr.vmem [resolvable:$true] %s46_s23 }
  0x1b   :  { %s910_s24 = scalar_lea.vmem %s26_s21, 32  ;;  %p915_p11 = scmp.lt.s32.totalorder %s26_s21, %s26_s21 }
  0x1c   :  { %p911_p10 = scmp.ne.s32.totalorder %s26_s21, %s910_s24  ;;  %p916_p12 = scmp.lt.s32.totalorder %s910_s24, %s910_s24 }
  0x1e   :  { %p917_p13 = por %p916_p12, %p915_p11 }
  0x20   :  { %p918_p0 = pnand %p917_p13, %p911_p10 }
  0x22   :  { %921 = shalt.err (!%p918_p0)
}
  0x23   :  { %28 = dma.hbm_to_vmem [thread:$0]  %s1107_s0, 32, %s26_s21, [#allocation3]  }
  0x24   :  { %s930_s26 = scalar_lea.vmem %s47_s23, 512  ;;  %p935_p2 = scmp.lt.s32.totalorder %s47_s23, %s47_s23 }
  0x25   :  { %p931_p1 = scmp.ne.s32.totalorder %s47_s23, %s930_s26  ;;  %p936_p3 = scmp.lt.s32.totalorder %s930_s26, %s930_s26 }
  0x27   :  { %p937_p4 = por %p936_p3, %p935_p2 }
  0x29   :  { %p938_p5 = pnand %p937_p4, %p931_p1 }
  0x2b   :  { %941 = shalt.err (!%p938_p5)
}
  0x2c   :  { %s1016_s4 = smov 128   ;;  %s1017_s27 = smov 8  }
  0x2d   :  { %52 = dma.hbm_to_vmem [thread:$0]  %s1110_s3, 512, %s47_s23, [#allocation6], %s1016_s4, %s1016_s4, %s1017_s27  }
  0x2e   :  { %s1018_s30 = smov [#allocation10]  }
  0x2f   :  { %s68_s10 = sshll.u32 %s1018_s30, 4  ;;  %s69_s10 = int_to_ptr.vmem [resolvable:$true] %s68_s10 }
  0x30   :  { %s950_s11 = scalar_lea.vmem %s69_s10, 4096  ;;  %p955_p7 = scmp.lt.s32.totalorder %s69_s10, %s69_s10 }
  0x31   :  { %p951_p6 = scmp.ne.s32.totalorder %s69_s10, %s950_s11  ;;  %p956_p8 = scmp.lt.s32.totalorder %s950_s11, %s950_s11 }
  0x33   :  { %p957_p9 = por %p956_p8, %p955_p7 }
  0x35   :  { %p958_p10 = pnand %p957_p9, %p951_p6 }
  0x37   :  { %961 = shalt.err (!%p958_p10)
}
  0x38   :  { %s1019_s0 = smov 512   ;;  %s1020_s12 = smov 32  }
  0x39   :  { %74 = dma.hbm_to_vmem [thread:$0]  %s1112_s5, 4096, %s69_s10, [#allocation9], %s1019_s0, %s1019_s0, %s1020_s12  }
  0x3a   :  { %s1021_s15 = smov [#allocation11]  }
  0x3b   :  { %s82_s16 = sshll.u32 %s1021_s15, 4  ;;  %s83_s16 = int_to_ptr.vmem [resolvable:$true] %s82_s16 }
  0x3c   :  { %s970_s3 = scalar_lea.vmem %s83_s16, 16384  ;;  %p975_p12 = scmp.lt.s32.totalorder %s83_s16, %s83_s16 }
  0x3d   :  { %p971_p11 = scmp.ne.s32.totalorder %s83_s16, %s970_s3  ;;  %p976_p13 = scmp.lt.s32.totalorder %s970_s3, %s970_s3 }
  0x3f   :  { %p977_p0 = por %p976_p13, %p975_p12 }
  0x41   :  { %p978_p1 = pnand %p977_p0, %p971_p11 }
  0x43   :  { %981 = shalt.err (!%p978_p1)
}
  0x44   :  { %s1022_s17 = smov 256   ;;  %s1023_s18 = smov 16  }
  0x45   :  { %88 = dma.hbm_to_vmem [thread:$0]  %s1114_s7, 16384, %s83_s16, [#allocation12], %s1022_s17, %s1022_s17, %s1023_s18  }
  0x46   :  { %1002 = dma.done.wait [#allocation3], 32  }
  0x47   :  { %1003 = vsyncadd [#allocation3], 4294967264 }
  0x48   :  { %1004 = dma.done.wait [#allocation6], 640  }
  0x49   :  { %1005 = vsyncadd [#allocation6], 4294966656 }
  0x4a   :  { %1006 = dma.done.wait [#allocation9], 4112  }
  0x4b   :  { %1007 = vsyncadd [#allocation9], 4294963184 }
  0x4c   :  { %1008 = dma.done.wait [#allocation12], 16384  }
  0x4d   :  { %1009 = vsyncadd [#allocation12], 4294950912  ;;  %v1024_v0 = vmov 0.0   ;;  %vm1025_vm0 = vmmov 0   ;;  %vm118_vm1 = vcmask 64512   ;;  %v110_v1 = vld [vmem:[#allocation5] sm:$0xff] }
  0x4e   :  { %823 = vmatprep.subr.mxu0 %v1024_v0  ;;  %825 = vmatprep.mubr.msk.f32.mxu0 %vm1025_vm0, %v1024_v0  ;;  %v109_v2 = vld [vmem:[#allocation2] sm:$0x3]  ;;  %v196_v3 = vld [vmem:[#allocation7 + $0x18] sm:$0xff]  ;;  %v194_v5 = vld [vmem:[#allocation7 + $0x8] sm:$0xff]  ;;  %vm204_vm2 = vcmask 261120   ;;  %vm333_vm3 = vcmask 523264  }
  0x4f   :  { %828 = vmatprep.subr.mxu1 %v1024_v0  ;;  %836 = vmatprep.mubr.msk.f32.mxu1 %vm1025_vm0, %v1024_v0  ;;  %v195_v4 = vld [vmem:[#allocation7 + $0x10] sm:$0xff]  ;;  %v193_v6 = vld [vmem:[#allocation7] sm:$0xff] }
  0x50   :  { %824 = vmatpush3.msra.mxu0 %v110_v1  ;;  %829 = vmatpush3.msra.mxu1 %v196_v3  ;;  %v308_v7 = vld [vmem:[#allocation10 + $0xe8] sm:$0xff]  ;;  %v310_v8 = vld [vmem:[#allocation10 + $0xf8] sm:$0xff]  ;;  %v307_v9 = vld [vmem:[#allocation10 + $0xe0] sm:$0xff] }
  0x51   :  { %826 = vmatmul.mubr.msk.f32.vlgmr.msra.gmra.mxu0 %vm118_vm1, %v109_v2  ;;  %830 = vmatprep.subr.mxu1 %v1024_v0  ;;  %v304_v10 = vld [vmem:[#allocation10 + $0xc8] sm:$0xff]  ;;  %v303_v11 = vld [vmem:[#allocation10 + $0xc0] sm:$0xff]  ;;  %v807_v19 = vld [vmem:[%s1109_s2] ss:$0 sm:$0xff] }
  0x52   :  { %401 = vmatprep.mubr.f32.mxu0 %v1024_v0  ;;  %831 = vmatpush3.msra.mxu1 %v195_v4  ;;  %v300_v12 = vld [vmem:[#allocation10 + $0xa8] sm:$0xff]  ;;  %v299_v13 = vld [vmem:[#allocation10 + $0xa0] sm:$0xff]  ;;  %v309_v24 = vld [vmem:[#allocation10 + $0xf0] sm:$0xff] }
  0x53   :  { %832 = vmatprep.subr.mxu1 %v1024_v0  ;;  %353 = vmatprep.subr.mxu0 %v308_v7  ;;  %v296_v14 = vld [vmem:[#allocation10 + $0x88] sm:$0xff]  ;;  %v295_v15 = vld [vmem:[#allocation10 + $0x80] sm:$0xff]  ;;  %v306_v25 = vld [vmem:[#allocation10 + $0xd8] sm:$0xff] }
  0x54   :  { %833 = vmatpush3.msra.mxu1 %v194_v5  ;;  %354 = vmatpush1.msra.mxu0 %v307_v9  ;;  %v292_v16 = vld [vmem:[#allocation10 + $0x68] sm:$0xff]  ;;  %v291_v17 = vld [vmem:[#allocation10 + $0x60] sm:$0xff]  ;;  %v305_v26 = vld [vmem:[#allocation10 + $0xd0] sm:$0xff] }
  0x55   :  { %834 = vmatprep.subr.mxu1 %v1024_v0  ;;  %355 = vmatprep.subr.mxu0 %v304_v10  ;;  %v288_v18 = vld [vmem:[#allocation10 + $0x48] sm:$0xff]  ;;  %v302_v27 = vld [vmem:[#allocation10 + $0xb8] sm:$0xff]  ;;  %v301_v28 = vld [vmem:[#allocation10 + $0xb0] sm:$0xff] }
  0x56   :  { %835 = vmatpush3.msra.mxu1 %v193_v6  ;;  %356 = vmatpush1.msra.mxu0 %v303_v11  ;;  %v298_v29 = vld [vmem:[#allocation10 + $0x98] sm:$0xff]  ;;  %v297_v30 = vld [vmem:[#allocation10 + $0x90] sm:$0xff]  ;;  %v287_v34 = vld [vmem:[#allocation10 + $0x40] sm:$0xff] }
  0x57   :  { %424 = vmatprep.subr.mxu1 %v310_v8  ;;  %357 = vmatprep.subr.mxu0 %v300_v12  ;;  %v294_v31 = vld [vmem:[#allocation10 + $0x78] sm:$0xff]  ;;  %v293_v32 = vld [vmem:[#allocation10 + $0x70] sm:$0xff]  ;;  %v284_v36 = vld [vmem:[#allocation10 + $0x28] sm:$0xff] }
  0x58   :  { %358 = vmatpush1.msra.mxu0 %v299_v13  ;;  %v290_v33 = vld [vmem:[#allocation10 + $0x58] sm:$0xff]  ;;  %v289_v35 = vld [vmem:[#allocation10 + $0x50] sm:$0xff]  ;;  %v283_v38 = vld [vmem:[#allocation10 + $0x20] sm:$0xff] }
  0x59   :  { %359 = vmatprep.subr.mxu0 %v296_v14  ;;  %v286_v37 = vld [vmem:[#allocation10 + $0x38] sm:$0xff]  ;;  %v285_v39 = vld [vmem:[#allocation10 + $0x30] sm:$0xff]  ;;  %v280_v40 = vld [vmem:[#allocation10 + $0x8] sm:$0xff] }
  0x5a   :  { %360 = vmatpush1.msra.mxu0 %v295_v15  ;;  %v282_v41 = vld [vmem:[#allocation10 + $0x18] sm:$0xff]  ;;  %v279_v42 = vld [vmem:[#allocation10] sm:$0xff]  ;;  %v281_v43 = vld [vmem:[#allocation10 + $0x10] sm:$0xff] }
  0x5b   :  { %361 = vmatprep.subr.mxu0 %v292_v16  ;;  %v514_v44 = vld [vmem:[#allocation11 + $0xf8] sm:$0xff]  ;;  %v513_v51 = vld [vmem:[#allocation11 + $0xf0] sm:$0xff]  ;;  %v512_v53 = vld [vmem:[#allocation11 + $0xe8] sm:$0xff] }
  0x5c   :  { %362 = vmatpush1.msra.mxu0 %v291_v17  ;;  %v578_v45 = vld [vmem:[#allocation11 + $0x2f8] sm:$0xff]  ;;  %v577_v52 = vld [vmem:[#allocation11 + $0x2f0] sm:$0xff]  ;;  %v576_v54 = vld [vmem:[#allocation11 + $0x2e8] sm:$0xff] }
  0x5d   :  { %363 = vmatprep.subr.mxu0 %v288_v18  ;;  %v809_v46 = vld [vmem:[#allocation8] ss:$0 sm:$0xff]  ;;  %v511_v55 = vld [vmem:[#allocation11 + $0xe0] sm:$0xff]  ;;  %v509_v59 = vld [vmem:[#allocation11 + $0xd0] sm:$0xff] }
  0x5e   :  { %364 = vmatpush1.msra.mxu0 %v287_v34  ;;  %v575_v56 = vld [vmem:[#allocation11 + $0x2e0] sm:$0xff]  ;;  %v510_v57 = vld [vmem:[#allocation11 + $0xd8] sm:$0xff]  ;;  %v573_v60 = vld [vmem:[#allocation11 + $0x2d0] sm:$0xff] }
  0x5f   :  { %365 = vmatprep.subr.mxu0 %v284_v36  ;;  %v574_v58 = vld [vmem:[#allocation11 + $0x2d8] sm:$0xff]  ;;  %v508_v61 = vld [vmem:[#allocation11 + $0xc8] sm:$0xff]  ;;  %v507_v63 = vld [vmem:[#allocation11 + $0xc0] sm:$0xff] }
  0x60   :  { %366 = vmatpush1.msra.mxu0 %v283_v38  ;;  %v572_v62 = vld [vmem:[#allocation11 + $0x2c8] sm:$0xff]  ;;  %v506_v1 = vld [vmem:[#allocation11 + $0xb8] sm:$0xff]  ;;  %v505_v3 = vld [vmem:[#allocation11 + $0xb0] sm:$0xff] }
  0x61   :  { %367 = vmatprep.subr.mxu0 %v280_v40  ;;  %v570_v2 = vld [vmem:[#allocation11 + $0x2b8] sm:$0xff]  ;;  %v569_v4 = vld [vmem:[#allocation11 + $0x2b0] sm:$0xff]  ;;  %v504_v5 = vld [vmem:[#allocation11 + $0xa8] sm:$0xff] }
  0x62   :  { %368 = vmatpush1.msra.mxu0 %v279_v42  ;;  %v568_v6 = vld [vmem:[#allocation11 + $0x2a8] sm:$0xff]  ;;  %v503_v7 = vld [vmem:[#allocation11 + $0xa0] sm:$0xff]  ;;  %v502_v9 = vld [vmem:[#allocation11 + $0x98] sm:$0xff] }
  0x63   :  { %623 = vmatprep.subr.mxu0 %v514_v44  ;;  %v567_v8 = vld [vmem:[#allocation11 + $0x2a0] sm:$0xff]  ;;  %v566_v10 = vld [vmem:[#allocation11 + $0x298] sm:$0xff]  ;;  %v501_v11 = vld [vmem:[#allocation11 + $0x90] sm:$0xff] }
  0x64   :  { %v565_v12 = vld [vmem:[#allocation11 + $0x290] sm:$0xff]  ;;  %v500_v13 = vld [vmem:[#allocation11 + $0x88] sm:$0xff]  ;;  %v499_v15 = vld [vmem:[#allocation11 + $0x80] sm:$0xff] }
  0x65   :  { %v564_v14 = vld [vmem:[#allocation11 + $0x288] sm:$0xff]  ;;  %v563_v16 = vld [vmem:[#allocation11 + $0x280] sm:$0xff]  ;;  %v498_v17 = vld [vmem:[#allocation11 + $0x78] sm:$0xff] }
  0x66   :  { %v562_v18 = vld [vmem:[#allocation11 + $0x278] sm:$0xff]  ;;  %v553_v36 = vld [vmem:[#allocation11 + $0x230] sm:$0xff]  ;;  %v552_v38 = vld [vmem:[#allocation11 + $0x228] sm:$0xff] }
  0x67   :  { %v554_v34 = vld [vmem:[#allocation11 + $0x238] sm:$0xff]  ;;  %v551_v40 = vld [vmem:[#allocation11 + $0x220] sm:$0xff]  ;;  %v549_v44 = vld [vmem:[#allocation11 + $0x210] sm:$0xff] }
  0x68   :  { %v550_v42 = vld [vmem:[#allocation11 + $0x218] sm:$0xff] }
 0x111   :  { %v188_v20 = vpop.f32.mrf.mxu0 }
 0x112   :  { %v189_v21 = vadd.f32 %v807_v19, %v188_v20  ;;  %v497_v19 = vld [vmem:[#allocation11 + $0x70] sm:$0xff] }
 0x113   :  { %v827_v22 = vpop.f32.mrf.mxu0  ;;  %v561_v20 = vld [vmem:[#allocation11 + $0x270] sm:$0xff] }
 0x114   :  { %v192_v23 = vmax.f32 %v189_v21, 0.0  ;;  %v496_v21 = vld [vmem:[#allocation11 + $0x68] sm:$0xff] }
 0x115   :  { %v560_v22 = vld [vmem:[#allocation11 + $0x268] sm:$0xff] }
 0x116   :  { %837 = vmatmul.mubr.msk.f32.vlgmr.msra.gmra.mxu1 %vm204_vm2, %v192_v23  ;;  %v495_v23 = vld [vmem:[#allocation11 + $0x60] sm:$0xff] }
 0x117   :  { %425 = vmatpush1.msra.mxu1 %v309_v24  ;;  %472 = vmatprep.mubr.f32.mxu1 %v1024_v0  ;;  %v571_v0 = vld [vmem:[#allocation11 + $0x2c0] sm:$0xff] }
 0x118   :  { %426 = vmatprep.subr.mxu1 %v306_v25  ;;  %v559_v24 = vld [vmem:[#allocation11 + $0x260] sm:$0xff]  ;;  %v494_v25 = vld [vmem:[#allocation11 + $0x58] sm:$0xff] }
 0x119   :  { %427 = vmatpush1.msra.mxu1 %v305_v26  ;;  %v558_v26 = vld [vmem:[#allocation11 + $0x258] sm:$0xff] }
 0x11a   :  { %428 = vmatprep.subr.mxu1 %v302_v27  ;;  %v493_v27 = vld [vmem:[#allocation11 + $0x50] sm:$0xff] }
 0x11b   :  { %429 = vmatpush1.msra.mxu1 %v301_v28  ;;  %v557_v28 = vld [vmem:[#allocation11 + $0x250] sm:$0xff] }
 0x11c   :  { %430 = vmatprep.subr.mxu1 %v298_v29  ;;  %v492_v29 = vld [vmem:[#allocation11 + $0x48] sm:$0xff] }
 0x11d   :  { %431 = vmatpush1.msra.mxu1 %v297_v30  ;;  %v556_v30 = vld [vmem:[#allocation11 + $0x248] sm:$0xff] }
 0x11e   :  { %432 = vmatprep.subr.mxu1 %v294_v31  ;;  %v491_v31 = vld [vmem:[#allocation11 + $0x40] sm:$0xff] }
 0x11f   :  { %433 = vmatpush1.msra.mxu1 %v293_v32  ;;  %v555_v32 = vld [vmem:[#allocation11 + $0x240] sm:$0xff] }
 0x120   :  { %434 = vmatprep.subr.mxu1 %v290_v33  ;;  %v490_v33 = vld [vmem:[#allocation11 + $0x38] sm:$0xff] }
 0x121   :  { %435 = vmatpush1.msra.mxu1 %v289_v35  ;;  %v489_v35 = vld [vmem:[#allocation11 + $0x30] sm:$0xff] }
 0x122   :  { %436 = vmatprep.subr.mxu1 %v286_v37  ;;  %v488_v37 = vld [vmem:[#allocation11 + $0x28] sm:$0xff] }
 0x123   :  { %437 = vmatpush1.msra.mxu1 %v285_v39  ;;  %v487_v39 = vld [vmem:[#allocation11 + $0x20] sm:$0xff] }
 0x124   :  { %438 = vmatprep.subr.mxu1 %v282_v41  ;;  %v486_v41 = vld [vmem:[#allocation11 + $0x18] sm:$0xff] }
 0x125   :  { %439 = vmatpush1.msra.mxu1 %v281_v43  ;;  %v485_v43 = vld [vmem:[#allocation11 + $0x10] sm:$0xff] }
 0x126   :  { %694 = vmatprep.subr.mxu1 %v578_v45  ;;  %v484_v45 = vld [vmem:[#allocation11 + $0x8] sm:$0xff] }
 0x1d6   :  { %v274_v47 = vpop.f32.mrf.mxu1 }
 0x1d7   :  { %v275_v48 = vadd.f32 %v809_v46, %v274_v47  ;;  %v548_v46 = vld [vmem:[#allocation11 + $0x208] sm:$0xff]  ;;  %v483_v47 = vld [vmem:[#allocation11] sm:$0xff] }
 0x1d8   :  { %v838_v49 = vpop.f32.mrf.mxu1 }
 0x1d9   :  { %v278_v50 = vmax.f32 %v275_v48, 0.0  ;;  %v547_v48 = vld [vmem:[#allocation11 + $0x200] sm:$0xff]  ;;  %v546_v49 = vld [vmem:[#allocation11 + $0x1f8] sm:$0xff] }
 0x1db   :  { %811 = vmatmul.mubr.msk.f32.vlgmr.msra.gmra.mxu0 %vm333_vm3, %v278_v50  ;;  %812 = vmatmul.mubr.msk.f32.vlgmr.msra.gmra.mxu1 %vm333_vm3, %v278_v50  ;;  %v610_v50 = vld [vmem:[#allocation11 + $0x3f8] sm:$0xff] }
 0x1dc   :  { %624 = vmatpush1.msra.mxu0 %v513_v51  ;;  %695 = vmatpush1.msra.mxu1 %v577_v52  ;;  %v545_v51 = vld [vmem:[#allocation11 + $0x1f0] sm:$0xff] }
 0x1dd   :  { %625 = vmatprep.subr.mxu0 %v512_v53  ;;  %696 = vmatprep.subr.mxu1 %v576_v54  ;;  %v609_v52 = vld [vmem:[#allocation11 + $0x3f0] sm:$0xff]  ;;  %v544_v53 = vld [vmem:[#allocation11 + $0x1e8] sm:$0xff] }
 0x1de   :  { %626 = vmatpush1.msra.mxu0 %v511_v55  ;;  %697 = vmatpush1.msra.mxu1 %v575_v56  ;;  %v608_v54 = vld [vmem:[#allocation11 + $0x3e8] sm:$0xff]  ;;  %v543_v55 = vld [vmem:[#allocation11 + $0x1e0] sm:$0xff] }
 0x1df   :  { %627 = vmatprep.subr.mxu0 %v510_v57  ;;  %698 = vmatprep.subr.mxu1 %v574_v58  ;;  %v607_v56 = vld [vmem:[#allocation11 + $0x3e0] sm:$0xff]  ;;  %v542_v57 = vld [vmem:[#allocation11 + $0x1d8] sm:$0xff] }
 0x1e0   :  { %628 = vmatpush1.msra.mxu0 %v509_v59  ;;  %699 = vmatpush1.msra.mxu1 %v573_v60  ;;  %v606_v58 = vld [vmem:[#allocation11 + $0x3d8] sm:$0xff]  ;;  %v541_v59 = vld [vmem:[#allocation11 + $0x1d0] sm:$0xff] }
 0x1e1   :  { %629 = vmatprep.subr.mxu0 %v508_v61  ;;  %700 = vmatprep.subr.mxu1 %v572_v62  ;;  %v605_v60 = vld [vmem:[#allocation11 + $0x3d0] sm:$0xff]  ;;  %v540_v61 = vld [vmem:[#allocation11 + $0x1c8] sm:$0xff] }
 0x1e2   :  { %630 = vmatpush1.msra.mxu0 %v507_v63  ;;  %701 = vmatpush1.msra.mxu1 %v571_v0  ;;  %v604_v62 = vld [vmem:[#allocation11 + $0x3c8] sm:$0xff]  ;;  %v539_v63 = vld [vmem:[#allocation11 + $0x1c0] sm:$0xff] }
 0x1e3   :  { %631 = vmatprep.subr.mxu0 %v506_v1  ;;  %702 = vmatprep.subr.mxu1 %v570_v2  ;;  %v603_v0 = vld [vmem:[#allocation11 + $0x3c0] sm:$0xff]  ;;  %v538_v1 = vld [vmem:[#allocation11 + $0x1b8] sm:$0xff] }
 0x1e4   :  { %632 = vmatpush1.msra.mxu0 %v505_v3  ;;  %703 = vmatpush1.msra.mxu1 %v569_v4  ;;  %v602_v2 = vld [vmem:[#allocation11 + $0x3b8] sm:$0xff]  ;;  %v537_v3 = vld [vmem:[#allocation11 + $0x1b0] sm:$0xff] }
 0x1e5   :  { %633 = vmatprep.subr.mxu0 %v504_v5  ;;  %704 = vmatprep.subr.mxu1 %v568_v6  ;;  %v601_v4 = vld [vmem:[#allocation11 + $0x3b0] sm:$0xff]  ;;  %v536_v5 = vld [vmem:[#allocation11 + $0x1a8] sm:$0xff] }
 0x1e6   :  { %634 = vmatpush1.msra.mxu0 %v503_v7  ;;  %705 = vmatpush1.msra.mxu1 %v567_v8  ;;  %v600_v6 = vld [vmem:[#allocation11 + $0x3a8] sm:$0xff]  ;;  %v535_v7 = vld [vmem:[#allocation11 + $0x1a0] sm:$0xff] }
 0x1e7   :  { %635 = vmatprep.subr.mxu0 %v502_v9  ;;  %706 = vmatprep.subr.mxu1 %v566_v10  ;;  %v599_v8 = vld [vmem:[#allocation11 + $0x3a0] sm:$0xff]  ;;  %v534_v9 = vld [vmem:[#allocation11 + $0x198] sm:$0xff] }
 0x1e8   :  { %636 = vmatpush1.msra.mxu0 %v501_v11  ;;  %707 = vmatpush1.msra.mxu1 %v565_v12  ;;  %v598_v10 = vld [vmem:[#allocation11 + $0x398] sm:$0xff]  ;;  %v533_v11 = vld [vmem:[#allocation11 + $0x190] sm:$0xff] }
 0x1e9   :  { %637 = vmatprep.subr.mxu0 %v500_v13  ;;  %708 = vmatprep.subr.mxu1 %v564_v14  ;;  %v597_v12 = vld [vmem:[#allocation11 + $0x390] sm:$0xff]  ;;  %v532_v13 = vld [vmem:[#allocation11 + $0x188] sm:$0xff] }
 0x1ea   :  { %638 = vmatpush1.msra.mxu0 %v499_v15  ;;  %709 = vmatpush1.msra.mxu1 %v563_v16  ;;  %v596_v14 = vld [vmem:[#allocation11 + $0x388] sm:$0xff]  ;;  %v531_v15 = vld [vmem:[#allocation11 + $0x180] sm:$0xff] }
 0x1eb   :  { %639 = vmatprep.subr.mxu0 %v498_v17  ;;  %710 = vmatprep.subr.mxu1 %v562_v18  ;;  %v595_v16 = vld [vmem:[#allocation11 + $0x380] sm:$0xff]  ;;  %v530_v17 = vld [vmem:[#allocation11 + $0x178] sm:$0xff] }
 0x1ec   :  { %640 = vmatpush1.msra.mxu0 %v497_v19  ;;  %711 = vmatpush1.msra.mxu1 %v561_v20  ;;  %v594_v18 = vld [vmem:[#allocation11 + $0x378] sm:$0xff]  ;;  %v529_v19 = vld [vmem:[#allocation11 + $0x170] sm:$0xff] }
 0x1ed   :  { %641 = vmatprep.subr.mxu0 %v496_v21  ;;  %712 = vmatprep.subr.mxu1 %v560_v22  ;;  %v593_v20 = vld [vmem:[#allocation11 + $0x370] sm:$0xff]  ;;  %v528_v21 = vld [vmem:[#allocation11 + $0x168] sm:$0xff] }
 0x1ee   :  { %642 = vmatpush1.msra.mxu0 %v495_v23  ;;  %713 = vmatpush1.msra.mxu1 %v559_v24  ;;  %v592_v22 = vld [vmem:[#allocation11 + $0x368] sm:$0xff]  ;;  %v527_v23 = vld [vmem:[#allocation11 + $0x160] sm:$0xff] }
 0x1ef   :  { %643 = vmatprep.subr.mxu0 %v494_v25  ;;  %714 = vmatprep.subr.mxu1 %v558_v26  ;;  %v591_v24 = vld [vmem:[#allocation11 + $0x360] sm:$0xff]  ;;  %v526_v25 = vld [vmem:[#allocation11 + $0x158] sm:$0xff] }
 0x1f0   :  { %644 = vmatpush1.msra.mxu0 %v493_v27  ;;  %715 = vmatpush1.msra.mxu1 %v557_v28  ;;  %v590_v26 = vld [vmem:[#allocation11 + $0x358] sm:$0xff]  ;;  %v525_v27 = vld [vmem:[#allocation11 + $0x150] sm:$0xff] }
 0x1f1   :  { %645 = vmatprep.subr.mxu0 %v492_v29  ;;  %716 = vmatprep.subr.mxu1 %v556_v30  ;;  %v589_v28 = vld [vmem:[#allocation11 + $0x350] sm:$0xff]  ;;  %v524_v29 = vld [vmem:[#allocation11 + $0x148] sm:$0xff] }
 0x1f2   :  { %646 = vmatpush1.msra.mxu0 %v491_v31  ;;  %717 = vmatpush1.msra.mxu1 %v555_v32  ;;  %v588_v30 = vld [vmem:[#allocation11 + $0x348] sm:$0xff]  ;;  %v523_v31 = vld [vmem:[#allocation11 + $0x140] sm:$0xff] }
 0x1f3   :  { %647 = vmatprep.subr.mxu0 %v490_v33  ;;  %718 = vmatprep.subr.mxu1 %v554_v34  ;;  %v587_v32 = vld [vmem:[#allocation11 + $0x340] sm:$0xff]  ;;  %v522_v33 = vld [vmem:[#allocation11 + $0x138] sm:$0xff] }
 0x1f4   :  { %648 = vmatpush1.msra.mxu0 %v489_v35  ;;  %719 = vmatpush1.msra.mxu1 %v553_v36  ;;  %v586_v34 = vld [vmem:[#allocation11 + $0x338] sm:$0xff]  ;;  %v521_v35 = vld [vmem:[#allocation11 + $0x130] sm:$0xff] }
 0x1f5   :  { %649 = vmatprep.subr.mxu0 %v488_v37  ;;  %720 = vmatprep.subr.mxu1 %v552_v38  ;;  %v585_v36 = vld [vmem:[#allocation11 + $0x330] sm:$0xff]  ;;  %v520_v37 = vld [vmem:[#allocation11 + $0x128] sm:$0xff] }
 0x1f6   :  { %650 = vmatpush1.msra.mxu0 %v487_v39  ;;  %721 = vmatpush1.msra.mxu1 %v551_v40  ;;  %v584_v38 = vld [vmem:[#allocation11 + $0x328] sm:$0xff]  ;;  %v519_v39 = vld [vmem:[#allocation11 + $0x120] sm:$0xff] }
 0x1f7   :  { %651 = vmatprep.subr.mxu0 %v486_v41  ;;  %722 = vmatprep.subr.mxu1 %v550_v42  ;;  %v583_v40 = vld [vmem:[#allocation11 + $0x320] sm:$0xff]  ;;  %v518_v41 = vld [vmem:[#allocation11 + $0x118] sm:$0xff] }
 0x1f8   :  { %652 = vmatpush1.msra.mxu0 %v485_v43  ;;  %723 = vmatpush1.msra.mxu1 %v549_v44  ;;  %v582_v42 = vld [vmem:[#allocation11 + $0x318] sm:$0xff]  ;;  %v517_v43 = vld [vmem:[#allocation11 + $0x110] sm:$0xff] }
 0x1f9   :  { %653 = vmatprep.subr.mxu0 %v484_v45  ;;  %724 = vmatprep.subr.mxu1 %v548_v46  ;;  %v581_v44 = vld [vmem:[#allocation11 + $0x310] sm:$0xff]  ;;  %v516_v45 = vld [vmem:[#allocation11 + $0x108] sm:$0xff] }
 0x1fa   :  { %654 = vmatpush1.msra.mxu0 %v483_v47  ;;  %725 = vmatpush1.msra.mxu1 %v547_v48  ;;  %v580_v46 = vld [vmem:[#allocation11 + $0x308] sm:$0xff]  ;;  %v515_v47 = vld [vmem:[#allocation11 + $0x100] sm:$0xff] }
 0x1fb   :  { %655 = vmatprep.subr.mxu0 %v546_v49  ;;  %726 = vmatprep.subr.mxu1 %v610_v50  ;;  %v579_v48 = vld [vmem:[#allocation11 + $0x300] sm:$0xff]  ;;  %v313_v49 = vlaneseq }
 0x1fc   :  { %656 = vmatpush2.msra.mxu0 %v545_v51  ;;  %727 = vmatpush2.msra.mxu1 %v609_v52 }
 0x1fd   :  { %657 = vmatprep.subr.mxu0 %v544_v53  ;;  %728 = vmatprep.subr.mxu1 %v608_v54  ;;  %v314_v50 = vshrl.u32 %v313_v49, 7  ;;  %v311_v53 = vld [vmem:[%s1113_s6] sm:$0xf] }
 0x1fe   :  { %658 = vmatpush2.msra.mxu0 %v543_v55  ;;  %729 = vmatpush2.msra.mxu1 %v607_v56 }
 0x1ff   :  { %659 = vmatprep.subr.mxu0 %v542_v57  ;;  %730 = vmatprep.subr.mxu1 %v606_v58  ;;  %v315_v51 = vsub.s32 0, %v314_v50  ;;  %v323_v52 = vsub.s32 2, %v314_v50  ;;  %v319_v54 = vsub.s32 1, %v314_v50  ;;  %v327_v55 = vsub.s32 3, %v314_v50 }
 0x200   :  { %660 = vmatpush2.msra.mxu0 %v541_v59  ;;  %731 = vmatpush2.msra.mxu1 %v605_v60 }
 0x201   :  { %661 = vmatprep.subr.mxu0 %v540_v61  ;;  %732 = vmatprep.subr.mxu1 %v604_v62  ;;  %v316_v56 = vrot.slane %v311_v53, %v315_v51  ;;  %v324_v57 = vrot.slane %v311_v53, %v323_v52  ;;  %v320_v58 = vrot.slane %v311_v53, %v319_v54 }
 0x202   :  { %662 = vmatpush2.msra.mxu0 %v539_v63  ;;  %733 = vmatpush2.msra.mxu1 %v603_v0  ;;  %v328_v59 = vrot.slane %v311_v53, %v327_v55 }
 0x203   :  { %663 = vmatprep.subr.mxu0 %v538_v1  ;;  %734 = vmatprep.subr.mxu1 %v602_v2 }
 0x204   :  { %664 = vmatpush2.msra.mxu0 %v537_v3  ;;  %735 = vmatpush2.msra.mxu1 %v601_v4 }
 0x205   :  { %665 = vmatprep.subr.mxu0 %v536_v5  ;;  %736 = vmatprep.subr.mxu1 %v600_v6 }
 0x206   :  { %666 = vmatpush2.msra.mxu0 %v535_v7  ;;  %737 = vmatpush2.msra.mxu1 %v599_v8  ;;  %v611_v8 = vld [vmem:[%s1115_s8] sm:$0x3]  ;;  %s1026_s8 = smov [#allocation13]  }
 0x207   :  { %667 = vmatprep.subr.mxu0 %v534_v9  ;;  %738 = vmatprep.subr.mxu1 %v598_v10  ;;  %v616_v9 = vrot.slane %v611_v8, %v315_v51  ;;  %v620_v10 = vrot.slane %v611_v8, %v319_v54  ;;  %s795_s23 = sshll.u32 %s1026_s8, 4  ;;  %s796_s23 = int_to_ptr.vmem [resolvable:$true] %s795_s23 }
 0x208   :  { %668 = vmatpush2.msra.mxu0 %v533_v11  ;;  %739 = vmatpush2.msra.mxu1 %v597_v12  ;;  %s982_s24 = scalar_lea.vmem %s796_s23, 64  ;;  %p987_p3 = scmp.lt.s32.totalorder %s796_s23, %s796_s23 }
 0x209   :  { %669 = vmatprep.subr.mxu0 %v532_v13  ;;  %740 = vmatprep.subr.mxu1 %v596_v14  ;;  %p983_p2 = scmp.ne.s32.totalorder %s796_s23, %s982_s24  ;;  %p988_p4 = scmp.lt.s32.totalorder %s982_s24, %s982_s24 }
 0x20a   :  { %670 = vmatpush2.msra.mxu0 %v531_v15  ;;  %741 = vmatpush2.msra.mxu1 %v595_v16 }
 0x20b   :  { %671 = vmatprep.subr.mxu0 %v530_v17  ;;  %742 = vmatprep.subr.mxu1 %v594_v18  ;;  %p989_p5 = por %p988_p4, %p987_p3 }
 0x20c   :  { %672 = vmatpush2.msra.mxu0 %v529_v19  ;;  %743 = vmatpush2.msra.mxu1 %v593_v20 }
 0x20d   :  { %673 = vmatprep.subr.mxu0 %v528_v21  ;;  %744 = vmatprep.subr.mxu1 %v592_v22  ;;  %p990_p6 = pnand %p989_p5, %p983_p2 }
 0x20e   :  { %674 = vmatpush2.msra.mxu0 %v527_v23  ;;  %745 = vmatpush2.msra.mxu1 %v591_v24 }
 0x20f   :  { %675 = vmatprep.subr.mxu0 %v526_v25  ;;  %746 = vmatprep.subr.mxu1 %v590_v26 }
 0x210   :  { %676 = vmatpush2.msra.mxu0 %v525_v27  ;;  %747 = vmatpush2.msra.mxu1 %v589_v28 }
 0x211   :  { %677 = vmatprep.subr.mxu0 %v524_v29  ;;  %748 = vmatprep.subr.mxu1 %v588_v30 }
 0x212   :  { %678 = vmatpush2.msra.mxu0 %v523_v31  ;;  %749 = vmatpush2.msra.mxu1 %v587_v32 }
 0x213   :  { %679 = vmatprep.subr.mxu0 %v522_v33  ;;  %750 = vmatprep.subr.mxu1 %v586_v34 }
 0x214   :  { %680 = vmatpush2.msra.mxu0 %v521_v35  ;;  %751 = vmatpush2.msra.mxu1 %v585_v36 }
 0x215   :  { %681 = vmatprep.subr.mxu0 %v520_v37  ;;  %752 = vmatprep.subr.mxu1 %v584_v38 }
 0x216   :  { %682 = vmatpush2.msra.mxu0 %v519_v39  ;;  %753 = vmatpush2.msra.mxu1 %v583_v40 }
 0x217   :  { %683 = vmatprep.subr.mxu0 %v518_v41  ;;  %754 = vmatprep.subr.mxu1 %v582_v42 }
 0x218   :  { %684 = vmatpush2.msra.mxu0 %v517_v43  ;;  %755 = vmatpush2.msra.mxu1 %v581_v44 }
 0x219   :  { %685 = vmatprep.subr.mxu0 %v516_v45  ;;  %756 = vmatprep.subr.mxu1 %v580_v46 }
 0x21a   :  { %686 = vmatpush2.msra.mxu0 %v515_v47  ;;  %757 = vmatpush2.msra.mxu1 %v579_v48 }
 0x29b   :  { %v403_v60 = vpop.f32.mrf.mxu0  ;;  %v474_v61 = vpop.f32.mrf.mxu1 }
 0x29c   :  { %v404_v62 = vadd.f32 %v403_v60, %v316_v56  ;;  %v475_v63 = vadd.f32 %v474_v61, %v324_v57 }
 0x29d   :  { %v405_v0 = vpop.f32.mrf.mxu0  ;;  %v476_v1 = vpop.f32.mrf.mxu1 }
 0x29e   :  { %v406_v2 = vadd.f32 %v405_v0, %v320_v58  ;;  %v477_v3 = vadd.f32 %v476_v1, %v328_v59  ;;  %v479_v6 = vmax.f32 %v404_v62, 0.0  ;;  %v481_v7 = vmax.f32 %v475_v63, 0.0 }
 0x2a0   :  { %v480_v4 = vmax.f32 %v406_v2, 0.0  ;;  %v482_v5 = vmax.f32 %v477_v3, 0.0 }
 0x2a2   :  { %687 = vmatprep.mubr.f32.mxu0 %v480_v4  ;;  %758 = vmatprep.mubr.f32.mxu1 %v482_v5 }
 0x2a3   :  { %688 = vmatmul.mubr.f32.vlgmr.msra.gmra.mxu0 %v479_v6  ;;  %759 = vmatmul.mubr.f32.vlgmr.msra.gmra.mxu1 %v481_v7 }
 0x363   :  { %v689_v11 = vpop.f32.mrf.mxu0  ;;  %v760_v12 = vpop.f32.mrf.mxu1 }
 0x364   :  { %v690_v13 = vadd.f32 %v689_v11, %v616_v9 }
 0x365   :  { %v691_v14 = vpop.f32.mrf.mxu0  ;;  %v762_v17 = vpop.f32.mrf.mxu1 }
 0x366   :  { %v761_v15 = vadd.f32 %v760_v12, %v690_v13  ;;  %v692_v16 = vadd.f32 %v691_v14, %v620_v10 }
 0x368   :  { %v813_v18 = vmul.f32 -1.442695, %v761_v15  ;;  %v763_v19 = vadd.f32 %v762_v17, %v692_v16 }
 0x36a   :  { %854 = vpow2.f32 %v813_v18  ;;  %v814_v20 = vmul.f32 -1.442695, %v763_v19 }
 0x36c   :  { %856 = vpow2.f32 %v814_v20 }
 0x377   :  { %v855_v21 = vpop.eup %854 }
 0x378   :  { %v771_v22 = vadd.f32 1.0, %v855_v21 }
 0x379   :  { %v857_v23 = vpop.eup %856 }
 0x37a   :  { %v772_v24 = vadd.f32 1.0, %v857_v23  ;;  %858 = vrcp.f32 %v771_v22 }
 0x37c   :  { %860 = vrcp.f32 %v772_v24 }
 0x387   :  { %v859_v25 = vpop.eup %858 }
 0x389   :  { %v861_v26 = vpop.eup %860 }
 0x38a   :  { %v779_v27 = vcombine.low %v859_v25, %v861_v26 }
 0x38c   :  { %815 = vst.sshfl [vmem:[#allocation13] sm:$0x33 pattern:$0x76325410] %v779_v27 }
 0x38d   :  { %993 = shalt.err (!%p990_p6)
}
 0x38e   :  { %798 = dma.vmem_to_hbm [thread:$0]  %s796_s23, 64, %s1116_s9, [#allocation4]  }
 0x38f   :  { %1010 = dma.done.wait [#allocation4], 64  }
 0x390   :  { %1011 = vsyncadd [#allocation4], 4294967232 }
 0x391   :  { %802 = vsyncpa [#allocation3], 1 }
 0x392   :  { %803 = vsyncpa [#allocation6], 1 }
 0x393   :  { %804 = vsyncpa [#allocation9], 1 }
 0x394   :  { %805 = vsyncpa [#allocation12], 1 }
 0x395   :  { %806 = vsyncpa [#allocation4], 1 }

</bundles_post_ra>
